<compile_context>
chip_gen: v6e
topology: v6e:2x2x1
jax: 0.10.0
libtpu: 0.0.40
codegen_flags: <defaults>
</compile_context>

<pallas_src>
import functools

import jax
import jax.numpy as jnp
import numpy as np
from jax.experimental import pallas as pl
from jax.experimental.pallas import tpu as pltpu


# ----------------------------------------------------------------------------
# Pallas kernels
# ----------------------------------------------------------------------------
def _conv_bn_lrelu_kernel(p_ref, w_ref, g_ref, b_ref, o_ref, *, use_bn):
    """Y^T = W @ P   (+ BatchNorm with batch stats)  + LeakyReLU(0.2).

    p_ref : (K, M)    bf16  im2col patches, transposed (K = Cin*kh*kw, M = N*OH*OW)
    w_ref : (Cout, K) bf16  conv weight, OIHW flattened
    g_ref, b_ref : (Cout, 1) f32  BN gamma / beta (ignored when use_bn=False)
    o_ref : (Cout, M) bf16  lane-dense output
    """
    y = jnp.dot(w_ref[...], p_ref[...], preferred_element_type=jnp.float32)
    if use_bn:
        mean = jnp.mean(y, axis=1, keepdims=True)          # stats over all N*OH*OW
        cen = y - mean
        var = jnp.mean(cen * cen, axis=1, keepdims=True)   # biased var, like torch BN
        scale = g_ref[...] * jax.lax.rsqrt(var + 1e-5)
        shift = b_ref[...] - mean * scale
        y = y * scale + shift                              # single FMA epilogue
    y = jnp.where(y >= 0.0, y, 0.2 * y)
    o_ref[...] = y.astype(o_ref.dtype)


def _tail_kernel(p_ref, w3_ref, g_ref, b_ref, w4_ref, o_ref, *, n_batch):
    """Fused layer3 (conv+BN+LeakyReLU) + layer4_32 (4x4 valid conv + sigmoid).

    p_ref : (K3, N*S) bf16  layer-3 patches^T   (S = 4*4 layer-3 output pixels)
    w3_ref: (C3, K3)  bf16
    g_ref, b_ref : (C3, 1) f32
    w4_ref: (C3, S)   f32   layer-4 weight == per-sample full-image dot
    o_ref : (1, N)    f32   sigmoid outputs
    """
    y = jnp.dot(w3_ref[...], p_ref[...], preferred_element_type=jnp.float32)  # (C3, N*S)
    mean = jnp.mean(y, axis=1, keepdims=True)
    cen = y - mean
    var = jnp.mean(cen * cen, axis=1, keepdims=True)
    scale = g_ref[...] * jax.lax.rsqrt(var + 1e-5)
    shift = b_ref[...] - mean * scale
    y = y * scale + shift
    y = jnp.where(y >= 0.0, y, 0.2 * y)

    w4 = w4_ref[...]                    # (C3, S)
    s = w4.shape[1]
    for i in range(n_batch):            # static unroll over batch
        z = y[:, i * s:(i + 1) * s] * w4
        val = jnp.sum(jnp.sum(z, axis=0, keepdims=True), axis=1, keepdims=True)  # (1,1)
        o_ref[:, i:i + 1] = jax.nn.sigmoid(val)


# ----------------------------------------------------------------------------
# pallas_call wrappers (whole problem fits VMEM at these sizes -> single block)
# ----------------------------------------------------------------------------
def conv_bn_lrelu(patches, w_mat, gamma, beta, *, use_bn):
    K, M = patches.shape
    cout = w_mat.shape[0]
    kern = functools.partial(_conv_bn_lrelu_kernel, use_bn=use_bn)
    return pl.pallas_call(
        kern,
        out_shape=jax.ShapeDtypeStruct((cout, M), jnp.bfloat16),
        grid=(1,),
        in_specs=[
            pl.BlockSpec((K, M), lambda i: (0, 0)),
            pl.BlockSpec((cout, K), lambda i: (0, 0)),
            pl.BlockSpec((cout, 1), lambda i: (0, 0)),
            pl.BlockSpec((cout, 1), lambda i: (0, 0)),
        ],
        out_specs=pl.BlockSpec((cout, M), lambda i: (0, 0)),
        compiler_params=pltpu.CompilerParams(dimension_semantics=("arbitrary",)),
    )(patches, w_mat, gamma, beta)


def conv_bn_lrelu_conv_sigmoid(patches, w3_mat, gamma, beta, w4_mat, *, n_batch):
    K, M = patches.shape
    c3 = w3_mat.shape[0]
    kern = functools.partial(_tail_kernel, n_batch=n_batch)
    return pl.pallas_call(
        kern,
        out_shape=jax.ShapeDtypeStruct((1, n_batch), jnp.float32),
        grid=(1,),
        in_specs=[
            pl.BlockSpec((K, M), lambda i: (0, 0)),
            pl.BlockSpec((c3, K), lambda i: (0, 0)),
            pl.BlockSpec((c3, 1), lambda i: (0, 0)),
            pl.BlockSpec((c3, 1), lambda i: (0, 0)),
            pl.BlockSpec(w4_mat.shape, lambda i: (0, 0)),
        ],
        out_specs=pl.BlockSpec((1, n_batch), lambda i: (0, 0)),
        compiler_params=pltpu.CompilerParams(dimension_semantics=("arbitrary",)),
    )(patches, w3_mat, gamma, beta, w4_mat)


# ----------------------------------------------------------------------------
# Glue: transposed im2col on the channels-first (C, N, H, W) layout.
# Rows ordered (c, ki, kj) to match OIHW weight.reshape(Cout, Cin*k*k);
# columns ordered (n, oh, ow).
# ----------------------------------------------------------------------------
def im2col_T(x_cnhw, k, stride, pad):
    C, N, H, W = x_cnhw.shape
    xp = jnp.pad(x_cnhw, ((0, 0), (0, 0), (pad, pad), (pad, pad)))
    OH = (H + 2 * pad - k) // stride + 1
    OW = (W + 2 * pad - k) // stride + 1
    taps = []
    for i in range(k):
        for j in range(k):
            taps.append(xp[:, :, i:i + stride * OH:stride, j:j + stride * OW:stride])
    p = jnp.stack(taps, axis=1)                 # (C, k*k, N, OH, OW)
    p = p.reshape(C * k * k, N * OH * OW)
    return p, OH, OW


# ----------------------------------------------------------------------------
# Discriminator (image_size == 32 path)
# ----------------------------------------------------------------------------
def init_discriminator_params(key, general_complexity, weights_mean, weights_std,
                              packing, image_channels):
    gc = general_complexity
    cin = image_channels * packing
    ks = jax.random.split(key, 6)

    def conv_w(k, cout, cin_):
        return weights_mean + weights_std * jax.random.normal(k, (cout, cin_, 4, 4), jnp.float32)

    params = {
        "w1": conv_w(ks[0], gc, cin),
        "w2": conv_w(ks[1], gc * 2, gc),
        "g2": 1.0 + weights_std * jax.random.normal(ks[2], (gc * 2,), jnp.float32),
        "b2": jnp.zeros((gc * 2,), jnp.float32),
        "w3": conv_w(ks[3], gc * 4, gc * 2),
        "g3": 1.0 + weights_std * jax.random.normal(ks[4], (gc * 4,), jnp.float32),
        "b3": jnp.zeros((gc * 4,), jnp.float32),
        "w4": conv_w(ks[5], 1, gc * 4),
    }
    return params


def discriminator_forward(x, params):
    """x: (N, C, 32, 32) NCHW float32 -> (N, 1, 1, 1) float32."""
    n = x.shape[0]
    # channels-first / spatial-in-lanes working layout: (C, N, H, W)
    xc = jnp.transpose(x, (1, 0, 2, 3)).astype(jnp.float32)

    def layer(act_cnhw, w_oihw, gamma, beta, *, use_bn):
        cout, cin, k, _ = w_oihw.shape
        p, oh, ow = im2col_T(act_cnhw, k, 2, 1)
        y = conv_bn_lrelu(
            p.astype(jnp.bfloat16),
            w_oihw.reshape(cout, cin * k * k).astype(jnp.bfloat16),
            gamma.reshape(cout, 1).astype(jnp.float32),
            beta.reshape(cout, 1).astype(jnp.float32),
            use_bn=use_bn,
        )                                   # (Cout, N*OH*OW) bf16, lane-dense
        return y.reshape(cout, n, oh, ow)   # cheap reshape, no transpose

    ones1 = jnp.ones((params["w1"].shape[0],), jnp.float32)
    zeros1 = jnp.zeros((params["w1"].shape[0],), jnp.float32)
    a1 = layer(xc, params["w1"], ones1, zeros1, use_bn=False)                 # (gc,  N,16,16)
    a2 = layer(a1, params["w2"], params["g2"], params["b2"], use_bn=True)     # (2gc, N, 8, 8)

    # layer3 (conv+BN+LeakyReLU) fused with layer4_32 (4x4 valid conv + sigmoid)
    w3 = params["w3"]
    c3, c2, k, _ = w3.shape
    p3, oh3, ow3 = im2col_T(a2, k, 2, 1)                                      # (c2*16, N*16)
    w4 = params["w4"]                                                         # (1, c3, 4, 4)
    assert w4.shape[2] == oh3 and w4.shape[3] == ow3
    out = conv_bn_lrelu_conv_sigmoid(
        p3.astype(jnp.bfloat16),
        w3.reshape(c3, c2 * k * k).astype(jnp.bfloat16),
        params["g3"].reshape(c3, 1).astype(jnp.float32),
        params["b3"].reshape(c3, 1).astype(jnp.float32),
        w4.reshape(c3, oh3 * ow3).astype(jnp.float32),
        n_batch=n,
    )                                                                         # (1, N)
    return out.reshape(n, 1, 1, 1)


# ----------------------------------------------------------------------------
# Pure-JAX reference (for correctness check)
# ----------------------------------------------------------------------------
def _ref_forward(x, params):
    def conv(x, w, stride, pad):
        return jax.lax.conv_general_dilated(
            x, w, (stride, stride), [(pad, pad), (pad, pad)],
            dimension_numbers=("NCHW", "OIHW", "NCHW"))

    def bn(y, g, b):
        mean = y.mean(axis=(0, 2, 3), keepdims=True)
        var = ((y - mean) ** 2).mean(axis=(0, 2, 3), keepdims=True)
        return ((y - mean) * jax.lax.rsqrt(var + 1e-5)
                * g.reshape(1, -1, 1, 1) + b.reshape(1, -1, 1, 1))

    lrelu = lambda y: jnp.where(y >= 0, y, 0.2 * y)
    y = lrelu(conv(x, params["w1"], 2, 1))
    y = lrelu(bn(conv(y, params["w2"], 2, 1), params["g2"], params["b2"]))
    y = lrelu(bn(conv(y, params["w3"], 2, 1), params["g3"], params["b3"]))
    y = jax.nn.sigmoid(conv(y, params["w4"], 1, 0))
    return y


if __name__ == "__main__":
    # Discriminator(general_complexity=8, weights_mean=0.0, weights_std=0.02,
    #               packing=1, image_channels=4, image_size=32)
    key = jax.random.PRNGKey(0)
    k_params, k_x = jax.random.split(key)
    params = init_discriminator_params(k_params, general_complexity=8,
                                       weights_mean=0.0, weights_std=0.02,
                                       packing=1, image_channels=4)
    x = jax.random.normal(k_x, (2, 4, 32, 32), jnp.float32)   # NCHW

    out = jax.jit(discriminator_forward)(x, params)
    out = jax.block_until_ready(out)
    assert out.shape == (2, 1, 1, 1), out.shape

    ref = jax.block_until_ready(_ref_forward(x, params))
    np.testing.assert_allclose(np.asarray(out), np.asarray(ref), rtol=1e-2, atol=1e-2)

    print("KERNEL_OK")
</pallas_src>

<mosaic_0001>
module attributes {stable_mosaic.version = 11 : i64} {
  func.func @_conv_bn_lrelu_kernel(%arg0: i32, %arg1: memref<64x512xbf16, #tpu.memory_space<vmem>>, %arg2: memref<8x64xbf16, #tpu.memory_space<vmem>>, %arg3: memref<8x1xf32, #tpu.memory_space<vmem>>, %arg4: memref<8x1xf32, #tpu.memory_space<vmem>>, %arg5: memref<8x512xbf16, #tpu.memory_space<vmem>>) attributes {dimension_semantics = [#tpu.dimension_semantics<arbitrary>], iteration_bounds = array<i64: 1>, scalar_prefetch = 0 : i64, scratch_operands = 0 : i64, tpu.core_type = #tpu.core_type<tc>, window_params = [{pipeline_mode = #tpu.pipeline_mode<synchronous>, transform_indices = @transform_0, window_bounds = array<i64: 64, 512>}, {pipeline_mode = #tpu.pipeline_mode<synchronous>, transform_indices = @transform_1, window_bounds = array<i64: 8, 64>}, {pipeline_mode = #tpu.pipeline_mode<synchronous>, transform_indices = @transform_2, window_bounds = array<i64: 8, 1>}, {pipeline_mode = #tpu.pipeline_mode<synchronous>, transform_indices = @transform_3, window_bounds = array<i64: 8, 1>}, {pipeline_mode = #tpu.pipeline_mode<synchronous>, transform_indices = @transform_4, window_bounds = array<i64: 8, 512>}]} {
    %c0 = arith.constant 0 : index
    %c0_0 = arith.constant 0 : index
    %0 = vector.load %arg2[%c0, %c0_0] : memref<8x64xbf16, #tpu.memory_space<vmem>>, vector<8x64xbf16>
    %c0_1 = arith.constant 0 : index
    %c0_2 = arith.constant 0 : index
    %1 = vector.load %arg1[%c0_1, %c0_2] : memref<64x512xbf16, #tpu.memory_space<vmem>>, vector<64x512xbf16>
    %cst = arith.constant dense<0.000000e+00> : vector<8x512xf32>
    %2 = tpu.matmul %0, %1, %cst {dimension_numbers = #tpu.dot_dimension_numbers<[1], [0], [0], [1], [0, 0, 1, 1], [], []>} : vector<8x64xbf16>, vector<64x512xbf16>, vector<8x512xf32> -> vector<8x512xf32>
    %cst_3 = arith.constant 0.000000e+00 : f32
    %3 = vector.broadcast %cst_3 : f32 to vector<8x512xf32>
    %4 = arith.cmpf oge, %2, %3 : vector<8x512xf32>
    %cst_4 = arith.constant 2.000000e-01 : f32
    %5 = vector.broadcast %cst_4 : f32 to vector<8x512xf32>
    %6 = arith.mulf %5, %2 : vector<8x512xf32>
    %7 = arith.select %4, %2, %6 : vector<8x512xi1>, vector<8x512xf32>
    %8 = arith.truncf %7 : vector<8x512xf32> to vector<8x512xbf16>
    %c0_5 = arith.constant 0 : index
    %c0_6 = arith.constant 0 : index
    %9 = vector.load %arg5[%c0_5, %c0_6] : memref<8x512xbf16, #tpu.memory_space<vmem>>, vector<8x512xbf16>
    tpu.vector_store %arg5[%c0_5, %c0_6], %8 {strides = array<i32>} : memref<8x512xbf16, #tpu.memory_space<vmem>>, vector<8x512xbf16>,
    return
  }
  func.func @transform_0(%arg0: i32) -> (i32, i32) {
    %c0_i32 = arith.constant 0 : i32
    %c0_i32_0 = arith.constant 0 : i32
    %c0_i32_1 = arith.constant 0 : i32
    return %c0_i32, %c0_i32_0 : i32, i32
  }
  func.func @transform_1(%arg0: i32) -> (i32, i32) {
    %c0_i32 = arith.constant 0 : i32
    %c0_i32_0 = arith.constant 0 : i32
    %c0_i32_1 = arith.constant 0 : i32
    return %c0_i32, %c0_i32_0 : i32, i32
  }
  func.func @transform_2(%arg0: i32) -> (i32, i32) {
    %c0_i32 = arith.constant 0 : i32
    %c0_i32_0 = arith.constant 0 : i32
    %c0_i32_1 = arith.constant 0 : i32
    return %c0_i32, %c0_i32_0 : i32, i32
  }
  func.func @transform_3(%arg0: i32) -> (i32, i32) {
    %c0_i32 = arith.constant 0 : i32
    %c0_i32_0 = arith.constant 0 : i32
    %c0_i32_1 = arith.constant 0 : i32
    return %c0_i32, %c0_i32_0 : i32, i32
  }
  func.func @transform_4(%arg0: i32) -> (i32, i32) {
    %c0_i32 = arith.constant 0 : i32
    %c0_i32_0 = arith.constant 0 : i32
    %c0_i32_1 = arith.constant 0 : i32
    return %c0_i32, %c0_i32_0 : i32, i32
  }
}

module attributes {stable_mosaic.version = 11 : i64} {
  func.func @_conv_bn_lrelu_kernel(%arg0: i32, %arg1: memref<128x128xbf16, #tpu.memory_space<vmem>>, %arg2: memref<16x128xbf16, #tpu.memory_space<vmem>>, %arg3: memref<16x1xf32, #tpu.memory_space<vmem>>, %arg4: memref<16x1xf32, #tpu.memory_space<vmem>>, %arg5: memref<16x128xbf16, #tpu.memory_space<vmem>>) attributes {dimension_semantics = [#tpu.dimension_semantics<arbitrary>], iteration_bounds = array<i64: 1>, scalar_prefetch = 0 : i64, scratch_operands = 0 : i64, tpu.core_type = #tpu.core_type<tc>, window_params = [{pipeline_mode = #tpu.pipeline_mode<synchronous>, transform_indices = @transform_0, window_bounds = array<i64: 128, 128>}, {pipeline_mode = #tpu.pipeline_mode<synchronous>, transform_indices = @transform_1, window_bounds = array<i64: 16, 128>}, {pipeline_mode = #tpu.pipeline_mode<synchronous>, transform_indices = @transform_2, window_bounds = array<i64: 16, 1>}, {pipeline_mode = #tpu.pipeline_mode<synchronous>, transform_indices = @transform_3, window_bounds = array<i64: 16, 1>}, {pipeline_mode = #tpu.pipeline_mode<synchronous>, transform_indices = @transform_4, window_bounds = array<i64: 16, 128>}]} {
    %c0 = arith.constant 0 : index
    %c0_0 = arith.constant 0 : index
    %0 = vector.load %arg2[%c0, %c0_0] : memref<16x128xbf16, #tpu.memory_space<vmem>>, vector<16x128xbf16>
    %c0_1 = arith.constant 0 : index
    %c0_2 = arith.constant 0 : index
    %1 = vector.load %arg1[%c0_1, %c0_2] : memref<128x128xbf16, #tpu.memory_space<vmem>>, vector<128x128xbf16>
    %cst = arith.constant dense<0.000000e+00> : vector<16x128xf32>
    %2 = tpu.matmul %0, %1, %cst {dimension_numbers = #tpu.dot_dimension_numbers<[1], [0], [0], [1], [0, 0, 1, 1], [], []>} : vector<16x128xbf16>, vector<128x128xbf16>, vector<16x128xf32> -> vector<16x128xf32>
    %cst_3 = arith.constant dense<0.000000e+00> : vector<16xf32>
    %3 = vector.multi_reduction <add>, %2, %cst_3 [1] : vector<16x128xf32> to vector<16xf32>
    %4 = vector.shape_cast %3 : vector<16xf32> to vector<16x1xf32>
    %cst_4 = arith.constant 1.280000e+02 : f32
    %5 = vector.broadcast %cst_4 : f32 to vector<16x1xf32>
    %6 = arith.divf %4, %5 : vector<16x1xf32>
    %7 = vector.broadcast %6 : vector<16x1xf32> to vector<16x128xf32>
    %8 = arith.subf %2, %7 : vector<16x128xf32>
    %9 = arith.mulf %8, %8 : vector<16x128xf32>
    %cst_5 = arith.constant dense<0.000000e+00> : vector<16xf32>
    %10 = vector.multi_reduction <add>, %9, %cst_5 [1] : vector<16x128xf32> to vector<16xf32>
    %11 = vector.shape_cast %10 : vector<16xf32> to vector<16x1xf32>
    %cst_6 = arith.constant 1.280000e+02 : f32
    %12 = vector.broadcast %cst_6 : f32 to vector<16x1xf32>
    %13 = arith.divf %11, %12 : vector<16x1xf32>
    %c0_7 = arith.constant 0 : index
    %c0_8 = arith.constant 0 : index
    %14 = vector.load %arg3[%c0_7, %c0_8] : memref<16x1xf32, #tpu.memory_space<vmem>>, vector<16x1xf32>
    %cst_9 = arith.constant 9.99999974E-6 : f32
    %15 = vector.broadcast %cst_9 : f32 to vector<16x1xf32>
    %16 = arith.addf %13, %15 : vector<16x1xf32>
    %17 = math.rsqrt %16 : vector<16x1xf32>
    %18 = arith.mulf %14, %17 : vector<16x1xf32>
    %c0_10 = arith.constant 0 : index
    %c0_11 = arith.constant 0 : index
    %19 = vector.load %arg4[%c0_10, %c0_11] : memref<16x1xf32, #tpu.memory_space<vmem>>, vector<16x1xf32>
    %20 = arith.mulf %6, %18 : vector<16x1xf32>
    %21 = arith.subf %19, %20 : vector<16x1xf32>
    %22 = vector.broadcast %18 : vector<16x1xf32> to vector<16x128xf32>
    %23 = arith.mulf %2, %22 : vector<16x128xf32>
    %24 = vector.broadcast %21 : vector<16x1xf32> to vector<16x128xf32>
    %25 = arith.addf %23, %24 : vector<16x128xf32>
    %cst_12 = arith.constant 0.000000e+00 : f32
    %26 = vector.broadcast %cst_12 : f32 to vector<16x128xf32>
    %27 = arith.cmpf oge, %25, %26 : vector<16x128xf32>
    %cst_13 = arith.constant 2.000000e-01 : f32
    %28 = vector.broadcast %cst_13 : f32 to vector<16x128xf32>
    %29 = arith.mulf %28, %25 : vector<16x128xf32>
    %30 = arith.select %27, %25, %29 : vector<16x128xi1>, vector<16x128xf32>
    %31 = arith.truncf %30 : vector<16x128xf32> to vector<16x128xbf16>
    %c0_14 = arith.constant 0 : index
    %c0_15 = arith.constant 0 : index
    %32 = vector.load %arg5[%c0_14, %c0_15] : memref<16x128xbf16, #tpu.memory_space<vmem>>, vector<16x128xbf16>
    tpu.vector_store %arg5[%c0_14, %c0_15], %31 {strides = array<i32>} : memref<16x128xbf16, #tpu.memory_space<vmem>>, vector<16x128xbf16>,
    return
  }
  func.func @transform_0(%arg0: i32) -> (i32, i32) {
    %c0_i32 = arith.constant 0 : i32
    %c0_i32_0 = arith.constant 0 : i32
    %c0_i32_1 = arith.constant 0 : i32
    return %c0_i32, %c0_i32_0 : i32, i32
  }
  func.func @transform_1(%arg0: i32) -> (i32, i32) {
    %c0_i32 = arith.constant 0 : i32
    %c0_i32_0 = arith.constant 0 : i32
    %c0_i32_1 = arith.constant 0 : i32
    return %c0_i32, %c0_i32_0 : i32, i32
  }
  func.func @transform_2(%arg0: i32) -> (i32, i32) {
    %c0_i32 = arith.constant 0 : i32
    %c0_i32_0 = arith.constant 0 : i32
    %c0_i32_1 = arith.constant 0 : i32
    return %c0_i32, %c0_i32_0 : i32, i32
  }
  func.func @transform_3(%arg0: i32) -> (i32, i32) {
    %c0_i32 = arith.constant 0 : i32
    %c0_i32_0 = arith.constant 0 : i32
    %c0_i32_1 = arith.constant 0 : i32
    return %c0_i32, %c0_i32_0 : i32, i32
  }
  func.func @transform_4(%arg0: i32) -> (i32, i32) {
    %c0_i32 = arith.constant 0 : i32
    %c0_i32_0 = arith.constant 0 : i32
    %c0_i32_1 = arith.constant 0 : i32
    return %c0_i32, %c0_i32_0 : i32, i32
  }
}

module attributes {stable_mosaic.version = 11 : i64} {
  func.func @_tail_kernel(%arg0: i32, %arg1: memref<256x32xbf16, #tpu.memory_space<vmem>>, %arg2: memref<32x256xbf16, #tpu.memory_space<vmem>>, %arg3: memref<32x1xf32, #tpu.memory_space<vmem>>, %arg4: memref<32x1xf32, #tpu.memory_space<vmem>>, %arg5: memref<32x16xf32, #tpu.memory_space<vmem>>, %arg6: memref<1x2xf32, #tpu.memory_space<vmem>>) attributes {dimension_semantics = [#tpu.dimension_semantics<arbitrary>], iteration_bounds = array<i64: 1>, scalar_prefetch = 0 : i64, scratch_operands = 0 : i64, tpu.core_type = #tpu.core_type<tc>, window_params = [{pipeline_mode = #tpu.pipeline_mode<synchronous>, transform_indices = @transform_0, window_bounds = array<i64: 256, 32>}, {pipeline_mode = #tpu.pipeline_mode<synchronous>, transform_indices = @transform_1, window_bounds = array<i64: 32, 256>}, {pipeline_mode = #tpu.pipeline_mode<synchronous>, transform_indices = @transform_2, window_bounds = array<i64: 32, 1>}, {pipeline_mode = #tpu.pipeline_mode<synchronous>, transform_indices = @transform_3, window_bounds = array<i64: 32, 1>}, {pipeline_mode = #tpu.pipeline_mode<synchronous>, transform_indices = @transform_4, window_bounds = array<i64: 32, 16>}, {pipeline_mode = #tpu.pipeline_mode<synchronous>, transform_indices = @transform_5, window_bounds = array<i64: 1, 2>}]} {
    %c0 = arith.constant 0 : index
    %c0_0 = arith.constant 0 : index
    %0 = vector.load %arg2[%c0, %c0_0] : memref<32x256xbf16, #tpu.memory_space<vmem>>, vector<32x256xbf16>
    %c0_1 = arith.constant 0 : index
    %c0_2 = arith.constant 0 : index
    %1 = vector.load %arg1[%c0_1, %c0_2] : memref<256x32xbf16, #tpu.memory_space<vmem>>, vector<256x32xbf16>
    %cst = arith.constant dense<0.000000e+00> : vector<32x32xf32>
    %2 = tpu.matmul %0, %1, %cst {dimension_numbers = #tpu.dot_dimension_numbers<[1], [0], [0], [1], [0, 0, 1, 1], [], []>} : vector<32x256xbf16>, vector<256x32xbf16>, vector<32x32xf32> -> vector<32x32xf32>
    %cst_3 = arith.constant dense<0.000000e+00> : vector<32xf32>
    %3 = vector.multi_reduction <add>, %2, %cst_3 [1] : vector<32x32xf32> to vector<32xf32>
    %4 = vector.shape_cast %3 : vector<32xf32> to vector<32x1xf32>
    %cst_4 = arith.constant 3.200000e+01 : f32
    %5 = vector.broadcast %cst_4 : f32 to vector<32x1xf32>
    %6 = arith.divf %4, %5 : vector<32x1xf32>
    %7 = vector.broadcast %6 : vector<32x1xf32> to vector<32x32xf32>
    %8 = arith.subf %2, %7 : vector<32x32xf32>
    %9 = arith.mulf %8, %8 : vector<32x32xf32>
    %cst_5 = arith.constant dense<0.000000e+00> : vector<32xf32>
    %10 = vector.multi_reduction <add>, %9, %cst_5 [1] : vector<32x32xf32> to vector<32xf32>
    %11 = vector.shape_cast %10 : vector<32xf32> to vector<32x1xf32>
    %cst_6 = arith.constant 3.200000e+01 : f32
    %12 = vector.broadcast %cst_6 : f32 to vector<32x1xf32>
    %13 = arith.divf %11, %12 : vector<32x1xf32>
    %c0_7 = arith.constant 0 : index
    %c0_8 = arith.constant 0 : index
    %14 = vector.load %arg3[%c0_7, %c0_8] : memref<32x1xf32, #tpu.memory_space<vmem>>, vector<32x1xf32>
    %cst_9 = arith.constant 9.99999974E-6 : f32
    %15 = vector.broadcast %cst_9 : f32 to vector<32x1xf32>
    %16 = arith.addf %13, %15 : vector<32x1xf32>
    %17 = math.rsqrt %16 : vector<32x1xf32>
    %18 = arith.mulf %14, %17 : vector<32x1xf32>
    %c0_10 = arith.constant 0 : index
    %c0_11 = arith.constant 0 : index
    %19 = vector.load %arg4[%c0_10, %c0_11] : memref<32x1xf32, #tpu.memory_space<vmem>>, vector<32x1xf32>
    %20 = arith.mulf %6, %18 : vector<32x1xf32>
    %21 = arith.subf %19, %20 : vector<32x1xf32>
    %22 = vector.broadcast %18 : vector<32x1xf32> to vector<32x32xf32>
    %23 = arith.mulf %2, %22 : vector<32x32xf32>
    %24 = vector.broadcast %21 : vector<32x1xf32> to vector<32x32xf32>
    %25 = arith.addf %23, %24 : vector<32x32xf32>
    %cst_12 = arith.constant 0.000000e+00 : f32
    %26 = vector.broadcast %cst_12 : f32 to vector<32x32xf32>
    %27 = arith.cmpf oge, %25, %26 : vector<32x32xf32>
    %cst_13 = arith.constant 2.000000e-01 : f32
    %28 = vector.broadcast %cst_13 : f32 to vector<32x32xf32>
    %29 = arith.mulf %28, %25 : vector<32x32xf32>
    %30 = arith.select %27, %25, %29 : vector<32x32xi1>, vector<32x32xf32>
    %c0_14 = arith.constant 0 : index
    %c0_15 = arith.constant 0 : index
    %31 = vector.load %arg5[%c0_14, %c0_15] : memref<32x16xf32, #tpu.memory_space<vmem>>, vector<32x16xf32>
    %32 = vector.extract_strided_slice %30 {offsets = [0, 0], sizes = [32, 16], strides = [1, 1]} : vector<32x32xf32> to vector<32x16xf32>
    %33 = arith.mulf %32, %31 : vector<32x16xf32>
    %cst_16 = arith.constant dense<0.000000e+00> : vector<16xf32>
    %34 = vector.multi_reduction <add>, %33, %cst_16 [0] : vector<32x16xf32> to vector<16xf32>
    %35 = vector.shape_cast %34 : vector<16xf32> to vector<1x16xf32>
    %cst_17 = arith.constant dense<0.000000e+00> : vector<1xf32>
    %36 = vector.multi_reduction <add>, %35, %cst_17 [1] : vector<1x16xf32> to vector<1xf32>
    %37 = vector.shape_cast %36 : vector<1xf32> to vector<1x1xf32>
    %38 = arith.negf %37 : vector<1x1xf32>
    %39 = math.exp %38 : vector<1x1xf32>
    %cst_18 = arith.constant 1.000000e+00 : f32
    %40 = vector.broadcast %cst_18 : f32 to vector<1x1xf32>
    %41 = arith.addf %40, %39 : vector<1x1xf32>
    %42 = arith.divf %40, %41 : vector<1x1xf32>
    %c0_19 = arith.constant 0 : index
    %c0_20 = arith.constant 0 : index
    %43 = vector.load %arg6[%c0_19, %c0_20] : memref<1x2xf32, #tpu.memory_space<vmem>>, vector<1x1xf32>
    tpu.vector_store %arg6[%c0_19, %c0_20], %42 {strides = array<i32>} : memref<1x2xf32, #tpu.memory_space<vmem>>, vector<1x1xf32>,
    %44 = vector.extract_strided_slice %30 {offsets = [0, 16], sizes = [32, 16], strides = [1, 1]} : vector<32x32xf32> to vector<32x16xf32>
    %45 = arith.mulf %44, %31 : vector<32x16xf32>
    %cst_21 = arith.constant dense<0.000000e+00> : vector<16xf32>
    %46 = vector.multi_reduction <add>, %45, %cst_21 [0] : vector<32x16xf32> to vector<16xf32>
    %47 = vector.shape_cast %46 : vector<16xf32> to vector<1x16xf32>
    %cst_22 = arith.constant dense<0.000000e+00> : vector<1xf32>
    %48 = vector.multi_reduction <add>, %47, %cst_22 [1] : vector<1x16xf32> to vector<1xf32>
    %49 = vector.shape_cast %48 : vector<1xf32> to vector<1x1xf32>
    %50 = arith.negf %49 : vector<1x1xf32>
    %51 = math.exp %50 : vector<1x1xf32>
    %cst_23 = arith.constant 1.000000e+00 : f32
    %52 = vector.broadcast %cst_23 : f32 to vector<1x1xf32>
    %53 = arith.addf %52, %51 : vector<1x1xf32>
    %54 = arith.divf %52, %53 : vector<1x1xf32>
    %c0_24 = arith.constant 0 : index
    %c1 = arith.constant 1 : index
    %55 = vector.load %arg6[%c0_24, %c1] : memref<1x2xf32, #tpu.memory_space<vmem>>, vector<1x1xf32>
    tpu.vector_store %arg6[%c0_24, %c1], %54 {strides = array<i32>} : memref<1x2xf32, #tpu.memory_space<vmem>>, vector<1x1xf32>,
    return
  }
  func.func @transform_0(%arg0: i32) -> (i32, i32) {
    %c0_i32 = arith.constant 0 : i32
    %c0_i32_0 = arith.constant 0 : i32
    %c0_i32_1 = arith.constant 0 : i32
    return %c0_i32, %c0_i32_0 : i32, i32
  }
  func.func @transform_1(%arg0: i32) -> (i32, i32) {
    %c0_i32 = arith.constant 0 : i32
    %c0_i32_0 = arith.constant 0 : i32
    %c0_i32_1 = arith.constant 0 : i32
    return %c0_i32, %c0_i32_0 : i32, i32
  }
  func.func @transform_2(%arg0: i32) -> (i32, i32) {
    %c0_i32 = arith.constant 0 : i32
    %c0_i32_0 = arith.constant 0 : i32
    %c0_i32_1 = arith.constant 0 : i32
    return %c0_i32, %c0_i32_0 : i32, i32
  }
  func.func @transform_3(%arg0: i32) -> (i32, i32) {
    %c0_i32 = arith.constant 0 : i32
    %c0_i32_0 = arith.constant 0 : i32
    %c0_i32_1 = arith.constant 0 : i32
    return %c0_i32, %c0_i32_0 : i32, i32
  }
  func.func @transform_4(%arg0: i32) -> (i32, i32) {
    %c0_i32 = arith.constant 0 : i32
    %c0_i32_0 = arith.constant 0 : i32
    %c0_i32_1 = arith.constant 0 : i32
    return %c0_i32, %c0_i32_0 : i32, i32
  }
  func.func @transform_5(%arg0: i32) -> (i32, i32) {
    %c0_i32 = arith.constant 0 : i32
    %c0_i32_0 = arith.constant 0 : i32
    %c0_i32_1 = arith.constant 0 : i32
    return %c0_i32, %c0_i32_0 : i32, i32
  }
}

</mosaic_0001>

<bundles_post_ra>
// kernel: discriminator_forward.3
= control target key start
LH: loop header
LB: loop body
LE: loop exit
PB: predicated region body
PF: predicated region fallthrough
CT: control target
= control target key end

     0   :  { %v282_v1 = vmov 0   ;;  %vm115_vm0 = vcmask 523264   ;;  %s365_s0 = inlined_call_operand.vmem [shape: bf16[64,512], index: 0, kind: input, shape index: {}]   ;;  %s366_s2 = inlined_call_operand.vmem [shape: f32[8,1], index: 2, kind: input, shape index: {}]   ;;  %s367_s3 = inlined_call_operand.vmem [shape: f32[8,1], index: 3, kind: input, shape index: {}]   ;;  %s368_s1 = inlined_call_operand.vmem [shape: bf16[8,64], index: 1, kind: input, shape index: {}]   ;;  %s369_s4 = inlined_call_operand.vmem [shape: bf16[8,512], index: 4, kind: output, shape index: {}]  }
   0x1   :  { %v258_v0 = vld [vmem:[%s365_s0 + $0x64] ss:$16 sps:$4 sm:$0xff]   ;;  %151 = vmatprep.mubr.bf16.mxu0 %v282_v1  ;;  %192 = vmatprep.mubr.bf16.mxu1 %v282_v1  ;;  %v260_v2 = vld [vmem:[%s365_s0 + $0x6c] ss:$16 sps:$4 sm:$0xff]   ;;  %v262_v3 = vld [vmem:[%s365_s0 + $0x60] ss:$16 sps:$4 sm:$0xff]  }
   0x2   :  { %127 = vmatprep.subr.bf16.mxu0 %v258_v0  ;;  %v263_v4 = vld [vmem:[%s365_s0 + $0x68] ss:$16 sps:$4 sm:$0xff]   ;;  %168 = vmatprep.subr.bf16.mxu1 %v260_v2  ;;  %v264_v5 = vld [vmem:[%s365_s0 + $0x44] ss:$16 sps:$4 sm:$0xff]   ;;  %v266_v6 = vld [vmem:[%s365_s0 + $0x4c] ss:$16 sps:$4 sm:$0xff]  }
   0x3   :  { %128 = vmatpush1.bf16.msra.mxu0 %v262_v3  ;;  %169 = vmatpush1.bf16.msra.mxu1 %v263_v4  ;;  %v268_v7 = vld [vmem:[%s365_s0 + $0x40] ss:$16 sps:$4 sm:$0xff]   ;;  %v269_v8 = vld [vmem:[%s365_s0 + $0x48] ss:$16 sps:$4 sm:$0xff]   ;;  %v270_v9 = vld [vmem:[%s365_s0 + $0x24] ss:$16 sps:$4 sm:$0xff]  }
   0x4   :  { %129 = vmatprep.subr.bf16.mxu0 %v264_v5  ;;  %170 = vmatprep.subr.bf16.mxu1 %v266_v6  ;;  %v272_v10 = vld [vmem:[%s365_s0 + $0x2c] ss:$16 sps:$4 sm:$0xff]   ;;  %v274_v11 = vld [vmem:[%s365_s0 + $0x20] ss:$16 sps:$4 sm:$0xff]   ;;  %v275_v12 = vld [vmem:[%s365_s0 + $0x28] ss:$16 sps:$4 sm:$0xff]  }
   0x5   :  { %v276_v13 = vld [vmem:[%s365_s0 + $0x4] ss:$16 sps:$4 sm:$0xff]   ;;  %v278_v14 = vld [vmem:[%s365_s0 + $0xc] ss:$16 sps:$4 sm:$0xff]   ;;  %v280_v15 = vld [vmem:[%s365_s0] ss:$16 sps:$4 sm:$0xff]  }
   0x6   :  { %v281_v16 = vld [vmem:[%s365_s0 + $0x8] ss:$16 sps:$4 sm:$0xff]   ;;  %v18_v17 = vld [vmem:[%s368_s1] sm:$0xf] }
   0x7   :  { %130 = vmatpush1.bf16.msra.mxu0 %v268_v7  ;;  %171 = vmatpush1.bf16.msra.mxu1 %v269_v8 }
   0x8   :  { %131 = vmatprep.subr.bf16.mxu0 %v270_v9  ;;  %172 = vmatprep.subr.bf16.mxu1 %v272_v10 }
   0xb   :  { %132 = vmatpush1.bf16.msra.mxu0 %v274_v11  ;;  %173 = vmatpush1.bf16.msra.mxu1 %v275_v12 }
   0xc   :  { %133 = vmatprep.subr.bf16.mxu0 %v276_v13  ;;  %174 = vmatprep.subr.bf16.mxu1 %v278_v14 }
   0xf   :  { %134 = vmatpush1.bf16.msra.mxu0 %v280_v15  ;;  %175 = vmatpush1.bf16.msra.mxu1 %v281_v16 }
  0x12   :  { %251 = vmatmul.mubr.msk.bf16.vlgmr.msra.gmra.mxu0 %vm115_vm0, %v18_v17  ;;  %252 = vmatmul.mubr.msk.bf16.vlgmr.msra.gmra.mxu1 %vm115_vm0, %v18_v17 }
  0xd2   :  { %v153_v18 = vpop.f32.mrf.mxu0  ;;  %v194_v19 = vpop.f32.mrf.mxu1 }
  0xd3   :  { %v205_v20 = vmul.f32 0.2, %v153_v18  ;;  %vm201_vm1 = vcmp.ge.f32.partialorder %v153_v18, 0.0  ;;  %v207_v21 = vmul.f32 0.2, %v194_v19  ;;  %vm203_vm2 = vcmp.ge.f32.partialorder %v194_v19, 0.0 }
  0xd4   :  { %v155_v22 = vpop.f32.mrf.mxu0  ;;  %v196_v23 = vpop.f32.mrf.mxu1 }
  0xd5   :  { %vm202_vm3 = vcmp.ge.f32.partialorder %v155_v22, 0.0  ;;  %v206_v24 = vmul.f32 0.2, %v155_v22  ;;  %vm204_vm4 = vcmp.ge.f32.partialorder %v196_v23, 0.0  ;;  %v208_v25 = vmul.f32 0.2, %v196_v23 }
  0xd6   :  { %v157_v26 = vpop.f32.mrf.mxu0  ;;  %v198_v27 = vpop.f32.mrf.mxu1  ;;  %v209_v28 = vsel %vm201_vm1, %v153_v18, %v205_v20  ;;  %v211_v30 = vsel %vm203_vm2, %v194_v19, %v207_v21 }
  0xd7   :  { %v210_v29 = vsel %vm202_vm3, %v155_v22, %v206_v24  ;;  %v212_v32 = vsel %vm204_vm4, %v196_v23, %v208_v25 }
  0xd8   :  { %v255_v31 = vpack.c.bf16 %v210_v29, %v209_v28  ;;  %v158_v33 = vpop.f32.mrf.mxu0  ;;  %v199_v34 = vpop.f32.mrf.mxu1  ;;  %v256_v35 = vpack.c.bf16 %v212_v32, %v211_v30 }
  0xda   :  { %229 = vst [vmem:[%s369_s4] sm:$0xff] %v255_v31  ;;  %230 = vst [vmem:[%s369_s4 + $0x8] sm:$0xff] %v256_v35 }

// kernel: discriminator_forward.4
= control target key start
LH: loop header
LB: loop body
LE: loop exit
PB: predicated region body
PF: predicated region fallthrough
CT: control target
= control target key end

     0   :  { %v271_v0 = vmov 0.0   ;;  %vm272_vm0 = vmmov 0   ;;  %v273_v22 = vmov 0   ;;  %s341_s0 = inlined_call_operand.vmem [shape: bf16[128,128], index: 0, kind: input, shape index: {}]   ;;  %s342_s1 = inlined_call_operand.vmem [shape: bf16[16,128], index: 1, kind: input, shape index: {}]   ;;  %s343_s2 = inlined_call_operand.vmem [shape: f32[16,1], index: 2, kind: input, shape index: {}]   ;;  %s344_s3 = inlined_call_operand.vmem [shape: f32[16,1], index: 3, kind: input, shape index: {}]   ;;  %s345_s4 = inlined_call_operand.vmem [shape: bf16[16,128], index: 4, kind: output, shape index: {}]  }
   0x1   :  { %233 = vmatprep.subr.bf16.mxu0 %v271_v0  ;;  %v258_v1 = vld [vmem:[%s341_s0 + $0x38] sm:$0xff]   ;;  %249 = vmatprep.mubr.msk.bf16.mxu0 %vm272_vm0, %v271_v0  ;;  %v259_v2 = vld [vmem:[%s341_s0 + $0x30] sm:$0xff]   ;;  %v260_v3 = vld [vmem:[%s341_s0 + $0x28] sm:$0xff]  }
   0x2   :  { %234 = vmatpush3.bf16.msra.mxu0 %v258_v1  ;;  %v261_v4 = vld [vmem:[%s341_s0 + $0x20] sm:$0xff]   ;;  %v262_v5 = vld [vmem:[%s341_s0 + $0x18] sm:$0xff]   ;;  %v263_v6 = vld [vmem:[%s341_s0 + $0x10] sm:$0xff]   ;;  %256 = vset.pattern.permute.xlu0 %v273_v22 }
   0x3   :  { %235 = vmatprep.subr.bf16.mxu0 %v271_v0  ;;  %v264_v7 = vld [vmem:[%s341_s0 + $0x8] sm:$0xff]   ;;  %v265_v8 = vld [vmem:[%s341_s0] sm:$0xff]   ;;  %257 = vset.pattern.permute.xlu1 %v273_v22 }
   0x4   :  { %v266_v9 = vld [vmem:[%s342_s1] sm:$0xff]   ;;  %v149_v32 = vld [vmem:[%s343_s2 + $0x8] sm:$0xff] }
   0x5   :  { %v148_v29 = vld [vmem:[%s343_s2] sm:$0xff]  ;;  %v157_v39 = vld [vmem:[%s344_s3 + $0x8] sm:$0xff] }
   0x6   :  { %236 = vmatpush3.bf16.msra.mxu0 %v259_v2  ;;  %v156_v36 = vld [vmem:[%s344_s3] sm:$0xff] }
   0x7   :  { %237 = vmatprep.subr.bf16.mxu0 %v271_v0 }
   0xa   :  { %238 = vmatpush3.bf16.msra.mxu0 %v260_v3 }
   0xb   :  { %239 = vmatprep.subr.bf16.mxu0 %v271_v0 }
   0xe   :  { %240 = vmatpush3.bf16.msra.mxu0 %v261_v4 }
   0xf   :  { %241 = vmatprep.subr.bf16.mxu0 %v271_v0 }
  0x12   :  { %242 = vmatpush3.bf16.msra.mxu0 %v262_v5 }
  0x13   :  { %243 = vmatprep.subr.bf16.mxu0 %v271_v0 }
  0x16   :  { %244 = vmatpush3.bf16.msra.mxu0 %v263_v6 }
  0x17   :  { %245 = vmatprep.subr.bf16.mxu0 %v271_v0 }
  0x1a   :  { %246 = vmatpush3.bf16.msra.mxu0 %v264_v7 }
  0x1b   :  { %247 = vmatprep.subr.bf16.mxu0 %v271_v0 }
  0x1e   :  { %248 = vmatpush3.bf16.msra.mxu0 %v265_v8 }
  0x21   :  { %250 = vmatmul.mubr.bf16.vlgmr.msra.gmra.mxu0 %v266_v9 }
  0xe1   :  { %v124_v10 = vpop.f32.mrf.mxu0 }
  0xe2   :  { %131 = vadd.xlane.f32.xlu0 %v124_v10 }
  0xe3   :  { %v251_v11 = vpop.f32.mrf.mxu0 }
  0xe5   :  { %v127_v12 = vpop.f32.mrf.mxu0 }
  0xe6   :  { %133 = vadd.xlane.f32.xlu0 %v127_v12 }
  0xe7   :  { %v252_v13 = vpop.f32.mrf.mxu0 }
 0x16b   :  { %v132_v14 = vpop.xlane.xlu0 %131 }
 0x16c   :  { %v136_v15 = vmul.f32 0.0078125, %v132_v14 }
 0x16e   :  { %v138_v16 = vsub.f32 %v124_v10, %v136_v15 }
 0x16f   :  { %v134_v17 = vpop.xlane.xlu0 %133 }
 0x170   :  { %v137_v18 = vmul.f32 0.0078125, %v134_v17  ;;  %v140_v19 = vmul.f32 %v138_v16, %v138_v16 }
 0x172   :  { %142 = vadd.xlane.f32.xlu1 %v140_v19  ;;  %v139_v20 = vsub.f32 %v127_v12, %v137_v18 }
 0x174   :  { %v141_v21 = vmul.f32 %v139_v20, %v139_v20 }
 0x176   :  { %144 = vadd.xlane.f32.xlu1 %v141_v21 }
 0x1fb   :  { %v143_v23 = vpop.xlane.xlu1 %142 }
 0x1fc   :  { %v146_v24 = vmul.f32 0.0078125, %v143_v23 }
 0x1fe   :  { %v150_v25 = vadd.f32 1e-05, %v146_v24 }
 0x1ff   :  { %v145_v26 = vpop.xlane.xlu1 %144 }
 0x200   :  { %267 = vrsqrt.f32 %v150_v25  ;;  %v147_v27 = vmul.f32 0.0078125, %v145_v26 }
 0x202   :  { %v151_v28 = vadd.f32 1e-05, %v147_v27 }
 0x204   :  { %269 = vrsqrt.f32 %v151_v28 }
 0x20d   :  { %v268_v30 = vpop.eup %267 }
 0x20e   :  { %v154_v31 = vmul.f32 %v268_v30, %v148_v29 }
 0x210   :  { %164 = vperm.xlu0 %256, %v154_v31   ;;  %v158_v35 = vmul.f32 %v154_v31, %v136_v15 }
 0x211   :  { %v270_v33 = vpop.eup %269 }
 0x212   :  { %v155_v34 = vmul.f32 %v270_v33, %v149_v32  ;;  %v160_v37 = vsub.f32 %v156_v36, %v158_v35 }
 0x214   :  { %169 = vperm.xlu1 %257, %v155_v34   ;;  %v159_v38 = vmul.f32 %v155_v34, %v137_v18 }
 0x216   :  { %v161_v40 = vsub.f32 %v157_v39, %v159_v38 }
 0x218   :  { %176 = vperm.xlu1 %257, %v160_v37  }
 0x21c   :  { %181 = vperm.xlu1 %257, %v161_v40  }
 0x28b   :  { %v165_v41 = vpop.permute.xlu0 %164 }
 0x28c   :  { %v172_v43 = vmul.f32 %v165_v41, %v124_v10 }
 0x28f   :  { %v170_v42 = vpop.permute.xlu1 %169 }
 0x290   :  { %v173_v46 = vmul.f32 %v170_v42, %v127_v12 }
 0x293   :  { %v177_v44 = vpop.permute.xlu1 %176 }
 0x294   :  { %v184_v45 = vadd.f32 %v177_v44, %v172_v43 }
 0x296   :  { %v188_v48 = vmul.f32 0.2, %v184_v45  ;;  %vm186_vm1 = vcmp.ge.f32.partialorder %v184_v45, 0.0 }
 0x297   :  { %v182_v47 = vpop.permute.xlu1 %181 }
 0x298   :  { %v185_v49 = vadd.f32 %v182_v47, %v173_v46  ;;  %v190_v51 = vsel %vm186_vm1, %v184_v45, %v188_v48 }
 0x29a   :  { %vm187_vm2 = vcmp.ge.f32.partialorder %v185_v49, 0.0  ;;  %v189_v50 = vmul.f32 0.2, %v185_v49 }
 0x29c   :  { %v191_v52 = vsel %vm187_vm2, %v185_v49, %v189_v50 }
 0x29d   :  { %v222_v53 = vpack.c.bf16 %v191_v52, %v190_v51 }
 0x29f   :  { %223 = vst [vmem:[%s345_s4] sm:$0xff] %v222_v53  }

// kernel: discriminator_forward.5
= control target key start
LH: loop header
LB: loop body
LE: loop exit
PB: predicated region body
PF: predicated region fallthrough
CT: control target
= control target key end

     0   :  { %s772_s0 = inlined_call_operand.vmem [shape: bf16[256,32], index: 0, kind: input, shape index: {}]   ;;  %s773_s1 = inlined_call_operand.vmem [shape: bf16[32,256], index: 1, kind: input, shape index: {}]   ;;  %s774_s2 = inlined_call_operand.vmem [shape: f32[32,1], index: 2, kind: input, shape index: {}]   ;;  %s775_s3 = inlined_call_operand.vmem [shape: f32[32,1], index: 3, kind: input, shape index: {}]   ;;  %s776_s4 = inlined_call_operand.vmem [shape: f32[32,16], index: 4, kind: input, shape index: {}]   ;;  %s777_s5 = inlined_call_operand.hbm [shape: f32[1,2], index: 5, kind: output, shape index: {}]  }
   0x1   :  { %v521_v0 = vld [vmem:[%s772_s0 + $0x78] sm:$0xff]   ;;  %v523_v2 = vld [vmem:[%s772_s0 + $0x70] sm:$0xff]   ;;  %v525_v4 = vld [vmem:[%s772_s0 + $0x68] sm:$0xff]  }
   0x2   :  { %v522_v1 = vld [vmem:[%s772_s0 + $0x38] sm:$0xff]   ;;  %471 = vmatprep.subr.bf16.mxu0 %v521_v0  ;;  %499 = vmatprep.subr.bf16.mxu1 %v521_v0  ;;  %v524_v3 = vld [vmem:[%s772_s0 + $0x30] sm:$0xff]   ;;  %v526_v5 = vld [vmem:[%s772_s0 + $0x28] sm:$0xff]  }
   0x3   :  { %472 = vmatpush3.bf16.msra.mxu0 %v522_v1  ;;  %507 = vmatpush3.bf16.msra.mxu1 %v522_v1  ;;  %v527_v6 = vld [vmem:[%s772_s0 + $0x60] sm:$0xff]   ;;  %v529_v8 = vld [vmem:[%s772_s0 + $0x58] sm:$0xff]   ;;  %v531_v10 = vld [vmem:[%s772_s0 + $0x50] sm:$0xff]  }
   0x4   :  { %473 = vmatprep.subr.bf16.mxu0 %v523_v2  ;;  %500 = vmatprep.subr.bf16.mxu1 %v523_v2  ;;  %v528_v7 = vld [vmem:[%s772_s0 + $0x20] sm:$0xff]   ;;  %v530_v9 = vld [vmem:[%s772_s0 + $0x18] sm:$0xff]  }
   0x5   :  { %v539_v11 = vld [vmem:[%s773_s1 + $0x4] ss:$8 sps:$4 sm:$0xff]   ;;  %v542_v12 = vld [vmem:[%s773_s1 + $0x14] ss:$8 sps:$4 sm:$0xff]  }
   0x7   :  { %474 = vmatpush3.bf16.msra.mxu0 %v524_v3  ;;  %508 = vmatpush3.bf16.msra.mxu1 %v524_v3 }
   0x8   :  { %475 = vmatprep.subr.bf16.mxu0 %v525_v4  ;;  %501 = vmatprep.subr.bf16.mxu1 %v525_v4 }
   0xb   :  { %476 = vmatpush3.bf16.msra.mxu0 %v526_v5  ;;  %509 = vmatpush3.bf16.msra.mxu1 %v526_v5 }
   0xc   :  { %477 = vmatprep.subr.bf16.mxu0 %v527_v6  ;;  %502 = vmatprep.subr.bf16.mxu1 %v527_v6 }
   0xf   :  { %478 = vmatpush3.bf16.msra.mxu0 %v528_v7  ;;  %510 = vmatpush3.bf16.msra.mxu1 %v528_v7 }
  0x10   :  { %479 = vmatprep.subr.bf16.mxu0 %v529_v8  ;;  %503 = vmatprep.subr.bf16.mxu1 %v529_v8 }
  0x11   :  { %10 = vsyncpa [#allocation3], 0  ;;  %v532_v13 = vld [vmem:[%s772_s0 + $0x10] sm:$0xff]   ;;  %v533_v14 = vld [vmem:[%s772_s0 + $0x48] sm:$0xff]   ;;  %206 = vmatprep.mubr.bf16.mxu0 %v539_v11  ;;  %214 = vmatprep.mubr.bf16.mxu1 %v542_v12  ;;  %vm223_vm0 = vcmask 261120   ;;  %v581_v56 = vmov 0  }
  0x12   :  { %v534_v15 = vld [vmem:[%s772_s0 + $0x8] sm:$0xff]   ;;  %v535_v16 = vld [vmem:[%s772_s0 + $0x40] sm:$0xff]   ;;  %v540_v19 = vld [vmem:[%s773_s1 + $0x10] ss:$8 sps:$4 sm:$0xff]   ;;  %519 = vset.pattern.permute.xlu0 %v581_v56  ;;  %520 = vset.pattern.permute.xlu1 %v581_v56  ;;  %s582_s14 = smov 16   ;;  %vm361_vm4 = vcmask 130048  }
  0x13   :  { %480 = vmatpush3.bf16.msra.mxu0 %v530_v9  ;;  %511 = vmatpush3.bf16.msra.mxu1 %v530_v9  ;;  %v536_v17 = vld [vmem:[%s772_s0] sm:$0xff]   ;;  %v267_v8 = vld [vmem:[%s774_s2 + $0x10] sm:$0xff]  ;;  %v714_v9 = vld [vmem:[%s776_s4 + $0x8] sm:$0xff]  ;;  %vm406_vm6 = vcmask 261248   ;;  %vm384_vm7 = vcmask 0   ;;  %vm433_vm8 = vcmask 8200  }
  0x14   :  { %481 = vmatprep.subr.bf16.mxu0 %v531_v10  ;;  %504 = vmatprep.subr.bf16.mxu1 %v531_v10  ;;  %v537_v18 = vld [vmem:[%s773_s1] ss:$8 sps:$4 sm:$0xff]  }
  0x15   :  { %v265_v5 = vld [vmem:[%s774_s2] sm:$0xff] }
  0x17   :  { %482 = vmatpush3.bf16.msra.mxu0 %v532_v13  ;;  %512 = vmatpush3.bf16.msra.mxu1 %v532_v13  ;;  %v266_v13 = vld [vmem:[%s774_s2 + $0x8] sm:$0xff] }
  0x18   :  { %483 = vmatprep.subr.bf16.mxu0 %v533_v14  ;;  %505 = vmatprep.subr.bf16.mxu1 %v533_v14  ;;  %v724_v14 = vld [vmem:[%s776_s4 + $0x18] sm:$0xff] }
  0x1b   :  { %484 = vmatpush3.bf16.msra.mxu0 %v534_v15  ;;  %513 = vmatpush3.bf16.msra.mxu1 %v534_v15 }
  0x1c   :  { %485 = vmatprep.subr.bf16.mxu0 %v535_v16  ;;  %506 = vmatprep.subr.bf16.mxu1 %v535_v16 }
  0x1f   :  { %486 = vmatpush3.bf16.msra.mxu0 %v536_v17  ;;  %514 = vmatpush3.bf16.msra.mxu1 %v536_v17  ;;  %v281_v17 = vld [vmem:[%s775_s3] sm:$0xff] }
  0x22   :  { %207 = vmatmul.mubr.bf16.vlgmr.msra.gmra.mxu0 %v537_v18  ;;  %215 = vmatmul.mubr.bf16.vlgmr.msra.gmra.mxu1 %v540_v19 }
  0xe2   :  { %v487_v20 = vpop.f32.mrf.mxu0  ;;  %v493_v21 = vpop.f32.mrf.mxu1 }
  0xe4   :  { %v488_v22 = vpop.f32.mrf.mxu0  ;;  %v494_v23 = vpop.f32.mrf.mxu1 }
  0xe5   :  { %v675_v24 = vadd.f32 %v488_v22, %v487_v20  ;;  %v677_v25 = vadd.f32 %v494_v23, %v493_v21  ;;  %v268_v20 = vld [vmem:[%s774_s2 + $0x18] sm:$0xff]  ;;  %v283_v23 = vld [vmem:[%s775_s3 + $0x10] sm:$0xff] }
  0xe6   :  { %v490_v26 = vpop.f32.mrf.mxu0  ;;  %v496_v27 = vpop.f32.mrf.mxu1 }
  0xe7   :  { %v230_v28 = vsel %vm223_vm0, %v677_v25, 0.0  ;;  %v224_v29 = vsel %vm223_vm0, %v675_v24, 0.0 }
  0xe8   :  { %v497_v30 = vpop.f32.mrf.mxu1  ;;  %231 = vadd.xlane.f32.xlu1 %v230_v28  ;;  %v491_v31 = vpop.f32.mrf.mxu0  ;;  %225 = vadd.xlane.f32.xlu0 %v224_v29  ;;  %v282_v28 = vld [vmem:[%s775_s3 + $0x8] sm:$0xff] }
  0xe9   :  { %v683_v32 = vadd.f32 %v497_v30, %v496_v27  ;;  %v685_v33 = vadd.f32 %v491_v31, %v490_v26  ;;  %v284_v31 = vld [vmem:[%s775_s3 + $0x18] sm:$0xff]  ;;  %s583_s3 = smov 112  }
  0xeb   :  { %v233_v34 = vsel %vm223_vm0, %v683_v32, 0.0  ;;  %v227_v35 = vsel %vm223_vm0, %v685_v33, 0.0 }
  0xec   :  { %234 = vadd.xlane.f32.xlu1 %v233_v34  ;;  %228 = vadd.xlane.f32.xlu0 %v227_v35  ;;  %v353_v35 = vld [vmem:[%s776_s4] sm:$0xff] }
 0x171   :  { %v232_v36 = vpop.xlane.xlu1 %231  ;;  %v226_v37 = vpop.xlane.xlu0 %225 }
 0x172   :  { %v691_v38 = vmul.f32 0.03125, %v232_v36  ;;  %v237_v39 = vmul.f32 0.03125, %v226_v37  ;;  %v355_v36 = vld [vmem:[%s776_s4 + $0x10] sm:$0xff]  ;;  %s584_s4 = smov [#allocation2]  }
 0x173   :  { %s441_s30 = sshll.u32 %s584_s4, 4  ;;  %s442_s30 = int_to_ptr.vmem [resolvable:$true] %s441_s30 }
 0x174   :  { %v243_v40 = vsub.f32 %v677_v25, %v691_v38  ;;  %v241_v41 = vsub.f32 %v675_v24, %v237_v39  ;;  %s559_s6 = scalar_lea.vmem %s442_s30, 16  ;;  %s563_s7 = scalar_lea.vmem %s442_s30, 32 }
 0x175   :  { %v235_v42 = vpop.xlane.xlu1 %234  ;;  %v229_v43 = vpop.xlane.xlu0 %228  ;;  %p560_p0 = scmp.ne.s32.totalorder %s442_s30, %s559_s6  ;;  %p564_p1 = scmp.lt.s32.totalorder %s442_s30, %s442_s30 }
 0x176   :  { %v696_v44 = vmul.f32 0.03125, %v235_v42  ;;  %v238_v45 = vmul.f32 0.03125, %v229_v43  ;;  %v245_v46 = vmul.f32 %v241_v41, %v241_v41  ;;  %v247_v50 = vmul.f32 %v243_v40, %v243_v40  ;;  %p565_p2 = scmp.lt.s32.totalorder %s563_s7, %s559_s6 }
 0x178   :  { %v244_v47 = vsub.f32 %v683_v32, %v696_v44  ;;  %v242_v48 = vsub.f32 %v685_v33, %v238_v45  ;;  %v249_v49 = vsel %vm223_vm0, %v245_v46, 0.0  ;;  %v255_v52 = vsel %vm223_vm0, %v247_v50, 0.0  ;;  %p566_p3 = por %p565_p2, %p564_p1 }
 0x179   :  { %250 = vadd.xlane.f32.xlu0 %v249_v49 }
 0x17a   :  { %v246_v51 = vmul.f32 %v242_v48, %v242_v48  ;;  %v248_v54 = vmul.f32 %v244_v47, %v244_v47  ;;  %p567_p4 = pnand %p566_p3, %p560_p0 }
 0x17c   :  { %v252_v53 = vsel %vm223_vm0, %v246_v51, 0.0  ;;  %v258_v55 = vsel %vm223_vm0, %v248_v54, 0.0 }
 0x17d   :  { %256 = vadd.xlane.f32.xlu0 %v255_v52  ;;  %253 = vadd.xlane.f32.xlu1 %v252_v53 }
 0x181   :  { %259 = vadd.xlane.f32.xlu1 %v258_v55 }
 0x202   :  { %v251_v57 = vpop.xlane.xlu0 %250 }
 0x203   :  { %v261_v58 = vmul.f32 0.03125, %v251_v57 }
 0x205   :  { %v269_v59 = vadd.f32 1e-05, %v261_v58 }
 0x206   :  { %v254_v60 = vpop.xlane.xlu1 %253  ;;  %v257_v61 = vpop.xlane.xlu0 %256 }
 0x207   :  { %543 = vrsqrt.f32 %v269_v59  ;;  %v262_v62 = vmul.f32 0.03125, %v254_v60  ;;  %v263_v63 = vmul.f32 0.03125, %v257_v61 }
 0x209   :  { %v271_v0 = vadd.f32 1e-05, %v263_v63  ;;  %v270_v1 = vadd.f32 1e-05, %v262_v62 }
 0x20a   :  { %v260_v2 = vpop.xlane.xlu1 %259 }
 0x20b   :  { %545 = vrsqrt.f32 %v271_v0  ;;  %v264_v3 = vmul.f32 0.03125, %v260_v2 }
 0x20c   :  { %547 = vrsqrt.f32 %v270_v1 }
 0x20d   :  { %v272_v4 = vadd.f32 1e-05, %v264_v3 }
 0x20f   :  { %549 = vrsqrt.f32 %v272_v4 }
 0x214   :  { %v544_v6 = vpop.eup %543 }
 0x215   :  { %v277_v7 = vmul.f32 %v544_v6, %v265_v5 }
 0x217   :  { %295 = vperm.xlu0 %519, %v277_v7   ;;  %v285_v16 = vmul.f32 %v277_v7, %v237_v39 }
 0x218   :  { %v546_v10 = vpop.eup %545 }
 0x219   :  { %v279_v11 = vmul.f32 %v546_v10, %v267_v8  ;;  %v548_v12 = vpop.eup %547  ;;  %v289_v18 = vsub.f32 %v281_v17, %v285_v16 }
 0x21a   :  { %v278_v15 = vmul.f32 %v548_v12, %v266_v13 }
 0x21b   :  { %392 = vrot.lane.b32.xlu0 %v714_v9, %s582_s14  ;;  %305 = vperm.xlu1 %520, %v279_v11   ;;  %v287_v22 = vmul.f32 %v279_v11, %v691_v38 }
 0x21c   :  { %v550_v19 = vpop.eup %549  ;;  %v286_v27 = vmul.f32 %v278_v15, %v238_v45 }
 0x21d   :  { %v280_v21 = vmul.f32 %v550_v19, %v268_v20  ;;  %v291_v26 = vsub.f32 %v283_v23, %v287_v22 }
 0x21e   :  { %v290_v29 = vsub.f32 %v282_v28, %v286_v27 }
 0x21f   :  { %396 = vrot.lane.b32.xlu0 %v724_v14, %s582_s14  ;;  %300 = vperm.xlu1 %520, %v278_v15   ;;  %v288_v30 = vmul.f32 %v280_v21, %v696_v44 }
 0x221   :  { %v292_v34 = vsub.f32 %v284_v31, %v288_v30 }
 0x223   :  { %319 = vperm.xlu1 %520, %v289_v18  }
 0x227   :  { %310 = vperm.xlu1 %520, %v280_v21  }
 0x22b   :  { %329 = vperm.xlu1 %520, %v291_v26  }
 0x22f   :  { %324 = vperm.xlu1 %520, %v290_v29  }
 0x233   :  { %334 = vperm.xlu1 %520, %v292_v34  }
 0x237   :  { %390 = vrot.lane.b32.xlu1 %v353_v35, %s582_s14 }
 0x23b   :  { %394 = vrot.lane.b32.xlu1 %v355_v36, %s582_s14 }
 0x292   :  { %v296_v39 = vpop.permute.xlu0 %295 }
 0x293   :  { %v313_v41 = vmul.f32 %v675_v24, %v296_v39 }
 0x296   :  { %v306_v37 = vpop.permute.xlu1 %305  ;;  %v393_v56 = vpop.permute.xlu0 %392 }
 0x297   :  { %v315_v44 = vmul.f32 %v677_v25, %v306_v37 }
 0x29a   :  { %v301_v38 = vpop.permute.xlu1 %300  ;;  %v397_v4 = vpop.permute.xlu0 %396 }
 0x29b   :  { %v314_v48 = vmul.f32 %v685_v33, %v301_v38 }
 0x29e   :  { %v320_v40 = vpop.permute.xlu1 %319 }
 0x29f   :  { %v337_v43 = vadd.f32 %v320_v40, %v313_v41 }
 0x2a1   :  { %v345_v46 = vmul.f32 0.2, %v337_v43  ;;  %vm341_vm1 = vcmp.ge.f32.partialorder %v337_v43, 0.0 }
 0x2a2   :  { %v311_v42 = vpop.permute.xlu1 %310 }
 0x2a3   :  { %v349_v52 = vsel %vm341_vm1, %v337_v43, %v345_v46  ;;  %v316_v53 = vmul.f32 %v683_v32, %v311_v42 }
 0x2a4   :  { %v357_v57 = vmul.f32 %v353_v35, %v349_v52 }
 0x2a6   :  { %v330_v45 = vpop.permute.xlu1 %329  ;;  %v362_v63 = vsel %vm361_vm4, %v357_v57, 0.0 }
 0x2a7   :  { %v339_v47 = vadd.f32 %v330_v45, %v315_v44 }
 0x2a9   :  { %v347_v49 = vmul.f32 0.2, %v339_v47  ;;  %vm343_vm2 = vcmp.ge.f32.partialorder %v339_v47, 0.0 }
 0x2aa   :  { %v325_v50 = vpop.permute.xlu1 %324 }
 0x2ab   :  { %v338_v51 = vadd.f32 %v325_v50, %v314_v48  ;;  %v351_v24 = vsel %vm343_vm2, %v339_v47, %v347_v49 }
 0x2ac   :  { %v359_v60 = vmul.f32 %v355_v36, %v351_v24 }
 0x2ad   :  { %v346_v54 = vmul.f32 0.2, %v338_v51  ;;  %vm342_vm3 = vcmp.ge.f32.partialorder %v338_v51, 0.0 }
 0x2ae   :  { %v335_v55 = vpop.permute.xlu1 %334  ;;  %v365_v5 = vsel %vm361_vm4, %v359_v60, 0.0 }
 0x2af   :  { %v340_v25 = vadd.f32 %v335_v55, %v316_v53  ;;  %v350_v58 = vsel %vm342_vm3, %v338_v51, %v346_v54 }
 0x2b0   :  { %v358_v59 = vmul.f32 %v714_v9, %v350_v58  ;;  %v403_v32 = vmul.f32 %v393_v56, %v350_v58 }
 0x2b1   :  { %v348_v33 = vmul.f32 0.2, %v340_v25  ;;  %vm344_vm5 = vcmp.ge.f32.partialorder %v340_v25, 0.0 }
 0x2b2   :  { %v363_v61 = vsel %vm361_vm4, %v358_v59, 0.0  ;;  %v391_v62 = vpop.permute.xlu1 %390  ;;  %v408_v10 = vsel %vm406_vm6, %v403_v32, 0.0 }
 0x2b3   :  { %v364_v0 = vadd.f32 %v363_v61, %v362_v63  ;;  %v402_v1 = vmul.f32 %v391_v62, %v349_v52  ;;  %v352_v2 = vsel %vm344_vm5, %v340_v25, %v348_v33 }
 0x2b4   :  { %v360_v3 = vmul.f32 %v724_v14, %v352_v2  ;;  %v405_v11 = vmul.f32 %v397_v4, %v352_v2 }
 0x2b5   :  { %v407_v6 = vsel %vm406_vm6, %v402_v1, 0.0  ;;  %v366_v7 = vadd.f32 %v365_v5, %v364_v0 }
 0x2b6   :  { %v367_v8 = vsel %vm361_vm4, %v360_v3, 0.0  ;;  %v395_v9 = vpop.permute.xlu1 %394  ;;  %v409_v15 = vadd.f32 %v408_v10, %v407_v6  ;;  %v412_v14 = vsel %vm406_vm6, %v405_v11, 0.0 }
 0x2b7   :  { %v368_v12 = vadd.f32 %v367_v8, %v366_v7  ;;  %v404_v13 = vmul.f32 %v395_v9, %v351_v24 }
 0x2b9   :  { %v410_v16 = vsel %vm406_vm6, %v404_v13, 0.0  ;;  %v369_v17 = vrot.slane %v368_v12, 4 }
 0x2ba   :  { %v411_v18 = vadd.f32 %v410_v16, %v409_v15 }
 0x2bb   :  { %v370_v19 = vadd.f32 %v369_v17, %v368_v12 }
 0x2bc   :  { %v413_v20 = vadd.f32 %v412_v14, %v411_v18 }
 0x2bd   :  { %v371_v21 = vrot.slane %v370_v19, 2 }
 0x2be   :  { %v414_v22 = vrot.slane %v413_v20, 4 }
 0x2bf   :  { %v372_v23 = vadd.f32 %v371_v21, %v370_v19 }
 0x2c0   :  { %v415_v26 = vadd.f32 %v414_v22, %v413_v20 }
 0x2c1   :  { %v373_v27 = vrot.slane %v372_v23, 1 }
 0x2c2   :  { %v416_v28 = vrot.slane %v415_v26, 2 }
 0x2c3   :  { %v374_v29 = vadd.f32 %v373_v27, %v372_v23 }
 0x2c4   :  { %v417_v30 = vadd.f32 %v416_v28, %v415_v26 }
 0x2c5   :  { %v375_v31 = vsel %vm361_vm4, %v374_v29, 0.0 }
 0x2c6   :  { %376 = vadd.xlane.f32.xlu0 %v375_v31  ;;  %v418_v34 = vrot.slane %v417_v30, 1 }
 0x2c8   :  { %v419_v35 = vadd.f32 %v418_v34, %v417_v30 }
 0x2ca   :  { %421 = vrot.lane.b32.xlu1 %v419_v35, %s583_s3 }
 0x33c   :  { %v422_v36 = vpop.permute.xlu1 %421 }
 0x33d   :  { %v424_v37 = vsel %vm361_vm4, %v422_v36, 0.0 }
 0x33e   :  { %425 = vadd.xlane.f32.xlu1 %v424_v37 }
 0x34f   :  { %v377_v38 = vpop.xlane.xlu0 %376 }
 0x350   :  { %v469_v39 = vmul.f32 -1.442695, %v377_v38 }
 0x352   :  { %551 = vpow2.f32 %v469_v39 }
 0x35f   :  { %v552_v40 = vpop.eup %551 }
 0x360   :  { %v381_v41 = vadd.f32 1.0, %v552_v40 }
 0x362   :  { %553 = vrcp.f32 %v381_v41 }
 0x36f   :  { %v554_v42 = vpop.eup %553 }
 0x370   :  { %385 = vst.msk [vmem:[#allocation2] sm:$0x1] %vm384_vm7, %v554_v42 }
 0x3c7   :  { %v426_v43 = vpop.xlane.xlu1 %425 }
 0x3c8   :  { %v470_v44 = vmul.f32 -1.442695, %v426_v43 }
 0x3ca   :  { %555 = vpow2.f32 %v470_v44 }
 0x3d7   :  { %v556_v45 = vpop.eup %555 }
 0x3d8   :  { %v430_v46 = vadd.f32 1.0, %v556_v45 }
 0x3da   :  { %557 = vrcp.f32 %v430_v46 }
 0x3e7   :  { %v558_v47 = vpop.eup %557 }
 0x3e8   :  { %434 = vst.msk [vmem:[#allocation2] sm:$0x1] %vm433_vm8, %v558_v47 }
 0x3e9   :  { %570 = shalt.err (!%p567_p4)
}
 0x3ea   :  { %444 = dma.vmem_to_hbm [thread:$0]  %s442_s30, 16, %s777_s5, [#allocation3]  }
 0x3eb   :  { %579 = dma.done.wait [#allocation3], 16  }
 0x3ec   :  { %580 = vsyncadd [#allocation3], 4294967280 }
 0x3ed   :  { %448 = vsyncpa [#allocation3], 1 }

</bundles_post_ra>
